<compile_context>
chip_gen: v7x
topology: tpu7x:2x2x1
jax: 0.10.0
libtpu: 0.0.40
codegen_flags: <defaults>
</compile_context>

<pallas_src>
import functools
import math

import jax
import jax.numpy as jnp
from jax import lax
from jax.experimental import pallas as pl
from jax.experimental.pallas import tpu as pltpu


def _round_up(x, m):
    return ((x + m - 1) // m) * m


def _vmem_capacity_bytes():
    try:
        info = pltpu.get_tpu_info()
        for attr in ("vmem_capacity_bytes", "vmem_size_bytes", "vmem_bytes"):
            val = getattr(info, attr, None)
            if val:
                return int(val)
    except Exception:
        pass
    return 64 * 1024 * 1024  # conservative default (v7x per-TC VMEM)


# -----------------------------------------------------------------------------
# Embedding lookup:  out[t, :] = w[ids[t], :]
#
# ids: scalar-prefetch (SMEM).  w: HBM (pl.ANY).  Rows are gathered with
# per-row async DMAs into a double-buffered VMEM scratch: block i+1's gathers
# are issued before waiting on block i, so random-row HBM latency is hidden
# across grid steps.  Grid = (n_outer, n_inner); the outer axis is "parallel"
# (v7x megacore) and priming happens at inner index 0 of each outer slice, so
# the double-buffer state never crosses a core boundary.
# -----------------------------------------------------------------------------
def _embed_gather_kernel(ids_ref, w_hbm, o_ref, buf, sem, *, tok_blk):
    c = pl.program_id(0)
    j = pl.program_id(1)
    n_inner = pl.num_programs(1)
    blk = c * n_inner + j  # global token-block index

    def issue(block_idx, slot):
        base = block_idx * tok_blk
        dst = buf.at[slot]

        @pl.loop(0, tok_blk)
        def _(r):
            row = ids_ref[base + r]  # scalar read from SMEM
            pltpu.make_async_copy(
                w_hbm.at[pl.ds(row, 1), :],   # dynamic src row in HBM
                dst.at[pl.ds(r, 1), :],       # dst row in VMEM scratch slot
                sem.at[slot],
            ).start()

    # Prime the pipeline at the start of this core's inner sweep.
    @pl.when(j == 0)
    def _():
        issue(blk, 0)

    # Prefetch next block's rows while this block's gathers land.
    @pl.when(j + 1 < n_inner)
    def _():
        issue(blk + 1, (j + 1) % 2)

    slot = j % 2
    # Wait for all tok_blk row copies of this block: one aggregate wait whose
    # byte count equals the sum of the issued per-row copies on sem[slot].
    pltpu.make_async_copy(buf.at[1 - slot], buf.at[slot], sem.at[slot]).wait()
    o_ref[...] = buf[slot]


def _embed_lookup_chunk(ids_flat, w, *, tok_blk, n_outer):
    v, e = w.shape
    (t,) = ids_flat.shape

    tok_blk = min(tok_blk, _round_up(t, 8))
    tok_blk = max(8, tok_blk - tok_blk % 8)
    n_outer = max(1, min(n_outer, -(-t // tok_blk)))  # no extra blocks just for cores
    t_pad = _round_up(t, tok_blk * n_outer)
    n_blocks = t_pad // tok_blk
    n_inner = n_blocks // n_outer

    if t_pad != t:
        ids_flat = jnp.pad(ids_flat, (0, t_pad - t))  # padded tail re-reads row 0

    out = pl.pallas_call(
        functools.partial(_embed_gather_kernel, tok_blk=tok_blk),
        out_shape=jax.ShapeDtypeStruct((t_pad, e), w.dtype),
        grid_spec=pltpu.PrefetchScalarGridSpec(
            num_scalar_prefetch=1,                         # ids -> SMEM
            grid=(n_outer, n_inner),
            in_specs=[pl.BlockSpec(memory_space=pl.ANY)],  # w stays in HBM
            out_specs=pl.BlockSpec(
                (tok_blk, e), lambda c, j, ids: (c * n_inner + j, 0)),
            scratch_shapes=[
                pltpu.VMEM((2, tok_blk, e), w.dtype),      # double-buffered gather
                pltpu.SemaphoreType.DMA((2,)),
            ],
        ),
        compiler_params=pltpu.CompilerParams(
            dimension_semantics=("parallel", "arbitrary"),
        ),
    )(ids_flat, w)

    return out[:t] if t_pad != t else out


def embed_lookup(ids, w, *, tok_blk=256, n_outer=2, max_tokens_per_call=16384):
    # ids: (...,) int  ->  (..., E) f32
    v, e = w.shape
    lead = ids.shape
    t = int(math.prod(lead)) if lead else 1

    # Clamp ids: out-of-range tokens must not drive an OOB HBM DMA (no runtime
    # bounds check on TPU).  Padded tail tokens just re-read row 0 (discarded).
    ids_flat = jnp.clip(ids.reshape(-1).astype(jnp.int32), 0, v - 1)

    # Chunk over T so the scalar-prefetched ids array never blows SMEM.
    chunks = []
    for start in range(0, t, max_tokens_per_call):
        stop = min(start + max_tokens_per_call, t)
        chunks.append(
            _embed_lookup_chunk(ids_flat[start:stop], w,
                                tok_blk=tok_blk, n_outer=n_outer))
    out = chunks[0] if len(chunks) == 1 else jnp.concatenate(chunks, axis=0)
    return out.reshape(*lead, e)


# -----------------------------------------------------------------------------
# Tied logits:   out = x @ w.T + b
#
# Weight arrives pre-transposed as wT (E, V), already in the MXU compute dtype
# (cast cached on the module).  Grid = (vocab outer, tokens inner); the wT /
# bias block indices are invariant along the inner axis, so the weight is
# streamed from HBM exactly once.  bf16 MXU inputs, f32 accumulation.
# -----------------------------------------------------------------------------
def _logits_kernel(x_ref, wt_ref, b_ref, o_ref):
    # x_ref: (tm, E)  wt_ref: (E, tn)  b_ref: (1, tn)  o_ref: (tm, tn)
    acc = lax.dot_general(
        x_ref[...],
        wt_ref[...],
        dimension_numbers=(((1,), (0,)), ((), ())),   # (tm,E) @ (E,tn)
        preferred_element_type=jnp.float32,
    )
    o_ref[...] = (acc + b_ref[...]).astype(o_ref.dtype)


def tied_logits(x, wT, b, *, tm=256, tn=1024, compute_dtype=jnp.bfloat16):
    # x: (..., E), wT: (E, V), b: (V,) or (1, V)  ->  (..., V) f32
    e, v = wT.shape
    lead = x.shape[:-1]
    t = int(math.prod(lead)) if lead else 1

    # MXU-friendly tiles, clamped to the (padded) problem size.
    tm = max(8, min(tm, _round_up(t, 8)))
    tm -= tm % 8
    tn = max(128, min(tn, _round_up(v, 128)))
    tn -= tn % 128

    cbytes = jnp.dtype(compute_dtype).itemsize
    cap = _vmem_capacity_bytes()
    if cap >= 96 * 1024 * 1024:        # v5e / v6e: 128 MiB physical VMEM
        budget, limit_cap = 88 << 20, 100 << 20
    else:                              # v7x: 64 MiB per TensorCore
        budget, limit_cap = 34 << 20, 46 << 20

    def tile_bytes(tm_, tn_):
        # double-buffered x / wT / bias tiles + double-buffered f32 out tile
        return 2 * (tm_ * e * cbytes + e * tn_ * cbytes + tn_ * 4 + tm_ * tn_ * 4)

    while tile_bytes(tm, tn) > budget and tn > 512:
        tn = max(512, (tn // 2) - (tn // 2) % 128)
    while tile_bytes(tm, tn) > budget and tm > 128:
        tm = max(128, (tm // 2) - (tm // 2) % 8)
    while tile_bytes(tm, tn) > budget and tn > 128:
        tn = max(128, (tn // 2) - (tn // 2) % 128)
    # TODO(synk): for very large E on v7x, tile K(=E) with an f32 VMEM
    #             accumulator instead of shrinking tn below lane-dense widths.

    vmem_limit = int(min(limit_cap, max(32 << 20, tile_bytes(tm, tn) + (4 << 20))))

    t_pad = _round_up(t, tm)
    x2 = x.reshape(t, e).astype(compute_dtype)
    if t_pad != t:
        x2 = jnp.pad(x2, ((0, t_pad - t), (0, 0)))
    wc = wT if wT.dtype == compute_dtype else wT.astype(compute_dtype)
    b_row = b.reshape(1, v)
    bc = b_row if b_row.dtype == jnp.float32 else b_row.astype(jnp.float32)

    out = pl.pallas_call(
        _logits_kernel,
        out_shape=jax.ShapeDtypeStruct((t_pad, v), jnp.float32),
        grid_spec=pltpu.PrefetchScalarGridSpec(
            num_scalar_prefetch=0,
            grid=(pl.cdiv(v, tn), t_pad // tm),   # vocab OUTER -> w streamed once
            in_specs=[
                pl.BlockSpec((tm, e), lambda j, i: (i, 0)),   # x
                pl.BlockSpec((e, tn), lambda j, i: (0, j)),   # wT (invariant in i)
                pl.BlockSpec((1, tn), lambda j, i: (0, j)),   # bias (invariant in i)
            ],
            out_specs=pl.BlockSpec((tm, tn), lambda j, i: (i, j)),
        ),
        compiler_params=pltpu.CompilerParams(
            dimension_semantics=("parallel", "parallel"),
            vmem_limit_bytes=vmem_limit,
        ),
    )(x2, wc, bc)

    if t_pad != t:
        out = out[:t]
    return out.reshape(*lead, v)


# -----------------------------------------------------------------------------
# Module wrapper (mirrors TiedEmbeddingSoftmax)
# -----------------------------------------------------------------------------
class TiedEmbeddingSoftmax:
    def __init__(self, vocab_size=256, embedding_size=128, key=None,
                 compute_dtype=jnp.bfloat16):
        if key is None:
            key = jax.random.PRNGKey(0)
        # torch.normal(0.0, 0.01, size=(V, E)) ; torch.zeros(V)
        self.w = 0.01 * jax.random.normal(
            key, (vocab_size, embedding_size), dtype=jnp.float32
        )
        self.b = jnp.zeros((vocab_size,), dtype=jnp.float32)
        # Cached ONCE: (E, V) layout in the MXU compute dtype + f32 bias row,
        # so no per-call V*E cast / transpose traffic.
        self._wT_c = jnp.asarray(self.w.T, dtype=compute_dtype)
        self._b_row = self.b.reshape(1, vocab_size).astype(jnp.float32)

    def __call__(self, inputs, embed=True):
        if embed:
            return embed_lookup(inputs, self.w)
        else:
            return tied_logits(inputs, self._wT_c, self._b_row)


if __name__ == "__main__":
    key = jax.random.PRNGKey(0)
    k_w, k_ids, k_x = jax.random.split(key, 3)

    VOCAB, EMB = 1024, 256
    B, S = 2, 64

    module = TiedEmbeddingSoftmax(vocab_size=VOCAB, embedding_size=EMB, key=k_w)

    # --- embed=True path: integer token ids -> embeddings -------------------
    token_ids = jax.random.randint(k_ids, (B, S), 0, VOCAB, dtype=jnp.int32)
    emb_out = module(token_ids, embed=True)
    jax.block_until_ready(emb_out)
    emb_ref = jnp.take(module.w, token_ids.reshape(-1), axis=0).reshape(B, S, EMB)
    assert emb_out.shape == (B, S, EMB)
    assert jnp.array_equal(emb_out, emb_ref)          # pure row copies -> exact

    # --- embed=False path: hidden states -> tied logits ---------------------
    hidden = jax.random.normal(k_x, (B, S, EMB), dtype=jnp.float32)
    logits = module(hidden, embed=False)
    jax.block_until_ready(logits)
    assert logits.shape == (B, S, VOCAB)

    # Tight check against a reference using the same bf16-input / f32-accum
    # rounding as the MXU path.
    ref_bf16 = jnp.einsum(
        "bse,ve->bsv",
        hidden.astype(jnp.bfloat16).astype(jnp.float32),
        module.w.astype(jnp.bfloat16).astype(jnp.float32),
    ) + module.b
    assert jnp.allclose(logits, ref_bf16, atol=1e-4, rtol=1e-4)

    # Loose sanity check against the full-f32 reference (bf16 MXU inputs).
    ref_f32 = jnp.einsum("bse,ve->bsv", hidden, module.w) + module.b
    assert jnp.allclose(logits, ref_f32, atol=3e-2, rtol=3e-2)

    print("KERNEL_OK")
</pallas_src>

<mosaic_0001>
module attributes {stable_mosaic.version = 11 : i64} {
  func.func @_embed_gather_kernel(%arg0: i32, %arg1: i32, %arg2: memref<128xi32, #tpu.memory_space<smem>>, %arg3: memref<1024x256xf32, #tpu.memory_space<any>>, %arg4: memref<128x256xf32, #tpu.memory_space<vmem>>, %arg5: memref<2x128x256xf32, #tpu.memory_space<vmem>>, %arg6: memref<2x!tpu.dma_semaphore, #tpu.memory_space<semaphore_mem>>) attributes {dimension_semantics = [#tpu.dimension_semantics<parallel>, #tpu.dimension_semantics<arbitrary>], iteration_bounds = array<i64: 1, 1>, scalar_prefetch = 1 : i64, scratch_operands = 2 : i64, tpu.core_type = #tpu.core_type<tc>, window_params = [{}, {transform_indices = @transform_1, window_bounds = array<i64: 128, 256>}]} {
    %c1_i32 = arith.constant 1 : i32
    %0 = arith.muli %arg0, %c1_i32 : i32
    %1 = arith.addi %0, %arg1 : i32
    %c0_i32 = arith.constant 0 : i32
    %2 = arith.cmpi eq, %arg1, %c0_i32 : i32
    %3 = arith.extui %2 : i1 to i32
    %c0_i32_0 = arith.constant 0 : i32
    %4 = arith.cmpi ne, %3, %c0_i32_0 : i32
    scf.if %4 {
      %c128_i32 = arith.constant 128 : i32
      %30 = arith.muli %1, %c128_i32 : i32
      %c0_i32_17 = arith.constant 0 : i32
      %c0_i32_18 = arith.constant 0 : i32
      %c128_i32_19 = arith.constant 128 : i32
      %31 = arith.addi %c0_i32_18, %c128_i32_19 : i32
      %c1_i32_20 = arith.constant 1 : i32
      scf.for %arg7 = %c0_i32_18 to %31 step %c1_i32_20  : i32 {
        %c1_i32_22 = arith.constant 1 : i32
        %32 = arith.muli %arg7, %c1_i32_22 : i32
        %c0_i32_23 = arith.constant 0 : i32
        %33 = arith.addi %c0_i32_23, %32 : i32
        %34 = arith.addi %30, %33 : i32
        %35 = arith.index_cast %34 : i32 to index
        %36 = memref.load %arg2[%35] : memref<128xi32, #tpu.memory_space<smem>>
        %c0_i32_24 = arith.constant 0 : i32
        %c0_i32_25 = arith.constant 0 : i32
        %37 = tpu.memref_slice %arg3[%36, %c0_i32_25] : memref<1024x256xf32, #tpu.memory_space<any>> -> memref<1x256xf32, #tpu.memory_space<any>>
        %c0_i32_26 = arith.constant 0 : i32
        %c0_i32_27 = arith.constant 0 : i32
        %38 = tpu.memref_slice %arg5[%c0_i32_17, %c0_i32_26, %c0_i32_27] : memref<2x128x256xf32, #tpu.memory_space<vmem>> -> memref<1x128x256xf32, #tpu.memory_space<vmem>>
        %39 = tpu.memref_squeeze %38 : memref<1x128x256xf32, #tpu.memory_space<vmem>> -> memref<128x256xf32, #tpu.memory_space<vmem>>
        %c0_i32_28 = arith.constant 0 : i32
        %40 = tpu.memref_slice %39[%33, %c0_i32_28] : memref<128x256xf32, #tpu.memory_space<vmem>> -> memref<1x256xf32, #tpu.memory_space<vmem>>
        %41 = tpu.memref_slice %arg6[%c0_i32_24] : memref<2x!tpu.dma_semaphore, #tpu.memory_space<semaphore_mem>> -> memref<1x!tpu.dma_semaphore, #tpu.memory_space<semaphore_mem>>
        %42 = tpu.memref_squeeze %41 : memref<1x!tpu.dma_semaphore, #tpu.memory_space<semaphore_mem>> -> memref<!tpu.dma_semaphore, #tpu.memory_space<semaphore_mem>>
        tpu.enqueue_dma source(%37 : memref<1x256xf32, #tpu.memory_space<any>>) target(%40 : memref<1x256xf32, #tpu.memory_space<vmem>>) target_semaphore(%42 : memref<!tpu.dma_semaphore, #tpu.memory_space<semaphore_mem>>)
      }
      %c128_i32_21 = arith.constant 128 : i32
    } else {
    }
    %c1_i32_1 = arith.constant 1 : i32
    %5 = arith.addi %arg1, %c1_i32_1 : i32
    %c1_i32_2 = arith.constant 1 : i32
    %6 = arith.cmpi slt, %5, %c1_i32_2 : i32
    %7 = arith.extui %6 : i1 to i32
    %c0_i32_3 = arith.constant 0 : i32
    %8 = arith.cmpi ne, %7, %c0_i32_3 : i32
    scf.if %8 {
      %c1_i32_17 = arith.constant 1 : i32
      %30 = arith.addi %1, %c1_i32_17 : i32
      %c1_i32_18 = arith.constant 1 : i32
      %31 = arith.addi %arg1, %c1_i32_18 : i32
      %c2_i32_19 = arith.constant 2 : i32
      %c0_i32_20 = arith.constant 0 : i32
      %32 = arith.cmpi eq, %c2_i32_19, %c0_i32_20 : i32
      %c1_i32_21 = arith.constant 1 : i32
      %33 = arith.select %32, %c1_i32_21, %c2_i32_19 : i32
      %34 = arith.remsi %31, %33 : i32
      %c0_i32_22 = arith.constant 0 : i32
      %35 = arith.cmpi ne, %34, %c0_i32_22 : i32
      %c0_i32_23 = arith.constant 0 : i32
      %36 = arith.cmpi slt, %34, %c0_i32_23 : i32
      %c0_i32_24 = arith.constant 0 : i32
      %37 = arith.cmpi slt, %33, %c0_i32_24 : i32
      %38 = arith.xori %36, %37 : i1
      %39 = arith.andi %38, %35 : i1
      %40 = arith.addi %34, %33 : i32
      %41 = arith.select %39, %40, %34 : i32
      %c128_i32 = arith.constant 128 : i32
      %42 = arith.muli %30, %c128_i32 : i32
      %c0_i32_25 = arith.constant 0 : i32
      %c128_i32_26 = arith.constant 128 : i32
      %43 = arith.addi %c0_i32_25, %c128_i32_26 : i32
      %c1_i32_27 = arith.constant 1 : i32
      scf.for %arg7 = %c0_i32_25 to %43 step %c1_i32_27  : i32 {
        %c1_i32_29 = arith.constant 1 : i32
        %44 = arith.muli %arg7, %c1_i32_29 : i32
        %c0_i32_30 = arith.constant 0 : i32
        %45 = arith.addi %c0_i32_30, %44 : i32
        %46 = arith.addi %42, %45 : i32
        %47 = arith.index_cast %46 : i32 to index
        %48 = memref.load %arg2[%47] : memref<128xi32, #tpu.memory_space<smem>>
        %c0_i32_31 = arith.constant 0 : i32
        %49 = tpu.memref_slice %arg3[%48, %c0_i32_31] : memref<1024x256xf32, #tpu.memory_space<any>> -> memref<1x256xf32, #tpu.memory_space<any>>
        %c0_i32_32 = arith.constant 0 : i32
        %c0_i32_33 = arith.constant 0 : i32
        %50 = tpu.memref_slice %arg5[%41, %c0_i32_32, %c0_i32_33] : memref<2x128x256xf32, #tpu.memory_space<vmem>> -> memref<1x128x256xf32, #tpu.memory_space<vmem>>
        %51 = tpu.memref_squeeze %50 : memref<1x128x256xf32, #tpu.memory_space<vmem>> -> memref<128x256xf32, #tpu.memory_space<vmem>>
        %c0_i32_34 = arith.constant 0 : i32
        %52 = tpu.memref_slice %51[%45, %c0_i32_34] : memref<128x256xf32, #tpu.memory_space<vmem>> -> memref<1x256xf32, #tpu.memory_space<vmem>>
        %53 = tpu.memref_slice %arg6[%41] : memref<2x!tpu.dma_semaphore, #tpu.memory_space<semaphore_mem>> -> memref<1x!tpu.dma_semaphore, #tpu.memory_space<semaphore_mem>>
        %54 = tpu.memref_squeeze %53 : memref<1x!tpu.dma_semaphore, #tpu.memory_space<semaphore_mem>> -> memref<!tpu.dma_semaphore, #tpu.memory_space<semaphore_mem>>
        tpu.enqueue_dma source(%49 : memref<1x256xf32, #tpu.memory_space<any>>) target(%52 : memref<1x256xf32, #tpu.memory_space<vmem>>) target_semaphore(%54 : memref<!tpu.dma_semaphore, #tpu.memory_space<semaphore_mem>>)
      }
      %c128_i32_28 = arith.constant 128 : i32
    } else {
    }
    %c2_i32 = arith.constant 2 : i32
    %c0_i32_4 = arith.constant 0 : i32
    %9 = arith.cmpi eq, %c2_i32, %c0_i32_4 : i32
    %c1_i32_5 = arith.constant 1 : i32
    %10 = arith.select %9, %c1_i32_5, %c2_i32 : i32
    %11 = arith.remsi %arg1, %10 : i32
    %c0_i32_6 = arith.constant 0 : i32
    %12 = arith.cmpi ne, %11, %c0_i32_6 : i32
    %c0_i32_7 = arith.constant 0 : i32
    %13 = arith.cmpi slt, %11, %c0_i32_7 : i32
    %c0_i32_8 = arith.constant 0 : i32
    %14 = arith.cmpi slt, %10, %c0_i32_8 : i32
    %15 = arith.xori %13, %14 : i1
    %16 = arith.andi %15, %12 : i1
    %17 = arith.addi %11, %10 : i32
    %18 = arith.select %16, %17, %11 : i32
    %c1_i32_9 = arith.constant 1 : i32
    %19 = arith.subi %c1_i32_9, %18 : i32
    %c0_i32_10 = arith.constant 0 : i32
    %c0_i32_11 = arith.constant 0 : i32
    %20 = tpu.memref_slice %arg5[%19, %c0_i32_10, %c0_i32_11] : memref<2x128x256xf32, #tpu.memory_space<vmem>> -> memref<1x128x256xf32, #tpu.memory_space<vmem>>
    %21 = tpu.memref_squeeze %20 : memref<1x128x256xf32, #tpu.memory_space<vmem>> -> memref<128x256xf32, #tpu.memory_space<vmem>>
    %c0_i32_12 = arith.constant 0 : i32
    %c0_i32_13 = arith.constant 0 : i32
    %22 = tpu.memref_slice %arg5[%18, %c0_i32_12, %c0_i32_13] : memref<2x128x256xf32, #tpu.memory_space<vmem>> -> memref<1x128x256xf32, #tpu.memory_space<vmem>>
    %23 = tpu.memref_squeeze %22 : memref<1x128x256xf32, #tpu.memory_space<vmem>> -> memref<128x256xf32, #tpu.memory_space<vmem>>
    %24 = tpu.memref_slice %arg6[%18] : memref<2x!tpu.dma_semaphore, #tpu.memory_space<semaphore_mem>> -> memref<1x!tpu.dma_semaphore, #tpu.memory_space<semaphore_mem>>
    %25 = tpu.memref_squeeze %24 : memref<1x!tpu.dma_semaphore, #tpu.memory_space<semaphore_mem>> -> memref<!tpu.dma_semaphore, #tpu.memory_space<semaphore_mem>>
    tpu.wait_dma2 semaphore(%25 : memref<!tpu.dma_semaphore, #tpu.memory_space<semaphore_mem>>) src(%21 : memref<128x256xf32, #tpu.memory_space<vmem>>) dst(%23 : memref<128x256xf32, #tpu.memory_space<vmem>>)
    %26 = arith.index_cast %18 : i32 to index
    %c0 = arith.constant 0 : index
    %c0_14 = arith.constant 0 : index
    %27 = vector.load %arg5[%26, %c0, %c0_14] : memref<2x128x256xf32, #tpu.memory_space<vmem>>, vector<1x128x256xf32>
    %28 = vector.shape_cast %27 : vector<1x128x256xf32> to vector<128x256xf32>
    %c0_15 = arith.constant 0 : index
    %c0_16 = arith.constant 0 : index
    %29 = vector.load %arg4[%c0_15, %c0_16] : memref<128x256xf32, #tpu.memory_space<vmem>>, vector<128x256xf32>
    tpu.vector_store %arg4[%c0_15, %c0_16], %28 {strides = array<i32>} : memref<128x256xf32, #tpu.memory_space<vmem>>, vector<128x256xf32>,
    return
  }
  func.func @transform_1(%arg0: i32, %arg1: i32, %arg2: memref<128xi32, #tpu.memory_space<smem>>) -> (i32, i32) {
    %c1_i32 = arith.constant 1 : i32
    %0 = arith.muli %arg0, %c1_i32 : i32
    %1 = arith.addi %0, %arg1 : i32
    %c0_i32 = arith.constant 0 : i32
    %c0_i32_0 = arith.constant 0 : i32
    return %1, %c0_i32 : i32, i32
  }
}

</mosaic_0001>

<bundles_post_ra>
// kernel: tpu_custom_call.1
= control target key start
LH: loop header
LB: loop body
LE: loop exit
PB: predicated region body
PF: predicated region fallthrough
CT: control target
= control target key end

     0   :  { %s399_s0 = inlined_call_operand.hbm [shape: s32[128], index: 0, kind: input, shape index: {}]   ;;  %s400_s1 = inlined_call_operand.hbm [shape: f32[1024,256], index: 1, kind: input, shape index: {}]   ;;  %s401_s2 = inlined_call_operand.hbm [shape: f32[128,256], index: 2, kind: output, shape index: {}]  }
   0x1   :  { %s257_s11 = scalar_lea.hbm %s399_s0, 16 }
   0x2   :  { %p258_p0 = scmp.ne.s32.totalorder %s399_s0, %s257_s11  ;;  %p261_p1 = scmp.lt.u32.totalorder %s257_s11, %s399_s0 }
   0x4   :  { %p263_p2 = pnand %p261_p1, %p258_p0 }
   0x6   :  { %266 = shalt.err (!%p263_p2)  }
   0x7   :  { %s327_s16 = smov [#allocation5]  }
   0x8   :  { %8 = dma.hbm_to_smem %s399_s0, 16, %s327_s16, [#allocation4] }
   0x9   :  { %317 = dma.done.wait [#allocation4], 16 }
   0xa   :  { %318 = vsyncadd [#allocation4], 4294967280 }
   0xb   :  { %10 = sfence }
   0xc   :  { %11 = vsyncpa [#allocation7], 0  ;;  %s361_s19 = smov 0  }
   0xd LB: > { %s27_s20 = sld [smem:[#allocation5 + %s325_s19]]  ;;  %s34_s21 = sshrl.u32 %s325_s19, 3  ;;  %s325_s19 = sphi %s361_s19, %s25_s19  }
   0xe   : > { %s35_s22 = sand.u32 7, %s325_s19   ;;  %s237_s23 = sshll.u32 %s34_s21, 4 }
   0xf   : > { %s37_s24 = sadd.s32 %s237_s23, %s35_s22  ;;  %s269_s9 = scalar_lea.hbm %s400_s1, 32768 }
  0x10   : > { %s38_s0 = scalar_lea.vmem [#allocation2], %s37_s24 }
  0x11   : > { %s40_s25 = sshll.u32 %s38_s0, 4  ;;  %s369_s25 = int_to_ptr.vmem [resolvable:$true] %s40_s25 }
  0x13   : > { %s28_s26 = sshrl.u32 %s27_s20, 3  ;;  %s29_s27 = sand.u32 7, %s27_s20  }
  0x14   : > { %s235_s28 = sshll.u32 %s28_s26, 4 }
  0x15   : > { %s31_s29 = sadd.s32 %s235_s28, %s29_s27 }
  0x16   : > { %s236_s30 = sshll.u32 %s31_s29, 4 }
  0x17   : > { %s33_s5 = scalar_lea.hbm %s400_s1, %s236_s30 }
  0x18   : > { %s267_s6 = scalar_lea.hbm %s33_s5, 32  ;;  %p270_p4 = scmp.lt.u32.totalorder %s33_s5, %s400_s1 }
  0x19   : > { %p268_p3 = scmp.ne.s32.totalorder %s33_s5, %s267_s6  ;;  %p271_p5 = scmp.lt.u32.totalorder %s269_s9, %s267_s6 }
  0x1a   : > { %p273_p7 = scmp.lt.u32.totalorder %s267_s6, %s33_s5 }
  0x1b   : > { %p272_p6 = por %p271_p5, %p270_p4 }
  0x1d   : > { %p274_p8 = por %p273_p7, %p272_p6 }
  0x1f   : > { %p275_p9 = pnand %p274_p8, %p268_p3 }
  0x21   : > { %278 = shalt.err (!%p275_p9)  }
  0x22   : > { %s279_s12 = scalar_lea.vmem %s369_s25, 32  ;;  %s328_s13 = smov [#allocation2]  }
  0x23   : > { %p280_p10 = scmp.ne.s32.totalorder %s369_s25, %s279_s12  ;;  %s281_s14 = sshll.u32 %s328_s13, 4  ;;  %s282_s14 = int_to_ptr.vmem [resolvable:$false] %s281_s14 }
  0x24   : > { %s283_s15 = scalar_lea.vmem %s282_s14, 8192  ;;  %p284_p11 = scmp.lt.s32.totalorder %s369_s25, %s282_s14 }
  0x25   : > { %p285_p12 = scmp.lt.s32.totalorder %s283_s15, %s279_s12 }
  0x27   : > { %p286_p13 = por %p285_p12, %p284_p11 }
  0x29   : > { %p287_p0 = pnand %p286_p13, %p280_p10 }
  0x2b   : > { %290 = shalt.err (!%p287_p0)  }
  0x2c   : > { %s329_s16 = smov 128   ;;  %s330_s17 = smov 1  }
  0x2d   : > { %43 = dma.hbm_to_vmem [thread:$0]  %s33_s5, 32, %s369_s25, [#allocation3], %s329_s16, %s329_s16, %s330_s17 }
  0x2e   : > { %s25_s19 = sadd.s32 1, %s325_s19  }
  0x2f   : > { %p22_p1 = scmp.ge.s32.totalorder %s25_s19, 128  }
  0x31   :  { %24 = sbr.rel (!%p22_p1) target bundleno = 13 (0xd), region = 52 }
  0x38   :  { %319 = dma.done.wait [#allocation3], 4096 }
  0x39   :  { %320 = vsyncadd [#allocation3], 4294963200  ;;  %v107_v0 = vld [vmem:[#allocation2] sm:$0xff]  ;;  %v108_v1 = vld [vmem:[#allocation2 + $0x8] sm:$0xff]  ;;  %s331_s1 = smov [#allocation6]  }
  0x3a   :  { %v109_v2 = vld [vmem:[#allocation2 + $0x10] sm:$0xff]  ;;  %139 = vst [vmem:[#allocation6] sm:$0xff] %v107_v0  ;;  %140 = vst [vmem:[#allocation6 + $0x8] sm:$0xff] %v108_v1  ;;  %v110_v3 = vld [vmem:[#allocation2 + $0x18] sm:$0xff]  ;;  %s181_s18 = sshll.u32 %s331_s1, 4  ;;  %s182_s18 = int_to_ptr.vmem [resolvable:$true] %s181_s18 }
  0x3b   :  { %141 = vst [vmem:[#allocation6 + $0x10] sm:$0xff] %v109_v2  ;;  %v111_v4 = vld [vmem:[#allocation2 + $0x20] sm:$0xff]  ;;  %v112_v5 = vld [vmem:[#allocation2 + $0x28] sm:$0xff]  ;;  %142 = vst [vmem:[#allocation6 + $0x18] sm:$0xff] %v110_v3  ;;  %s291_s19 = scalar_lea.vmem %s182_s18, 4096  ;;  %p296_p3 = scmp.lt.s32.totalorder %s182_s18, %s182_s18 }
  0x3c   :  { %143 = vst [vmem:[#allocation6 + $0x20] sm:$0xff] %v111_v4  ;;  %144 = vst [vmem:[#allocation6 + $0x28] sm:$0xff] %v112_v5  ;;  %v113_v6 = vld [vmem:[#allocation2 + $0x30] sm:$0xff]  ;;  %v114_v7 = vld [vmem:[#allocation2 + $0x38] sm:$0xff]  ;;  %p292_p2 = scmp.ne.s32.totalorder %s182_s18, %s291_s19  ;;  %p297_p4 = scmp.lt.s32.totalorder %s291_s19, %s291_s19 }
  0x3d   :  { %v115_v8 = vld [vmem:[#allocation2 + $0x40] sm:$0xff]  ;;  %145 = vst [vmem:[#allocation6 + $0x30] sm:$0xff] %v113_v6  ;;  %146 = vst [vmem:[#allocation6 + $0x38] sm:$0xff] %v114_v7  ;;  %v116_v9 = vld [vmem:[#allocation2 + $0x48] sm:$0xff] }
  0x3e   :  { %147 = vst [vmem:[#allocation6 + $0x40] sm:$0xff] %v115_v8  ;;  %v117_v10 = vld [vmem:[#allocation2 + $0x50] sm:$0xff]  ;;  %v118_v11 = vld [vmem:[#allocation2 + $0x58] sm:$0xff]  ;;  %148 = vst [vmem:[#allocation6 + $0x48] sm:$0xff] %v116_v9  ;;  %p298_p5 = por %p297_p4, %p296_p3 }
  0x3f   :  { %149 = vst [vmem:[#allocation6 + $0x50] sm:$0xff] %v117_v10  ;;  %150 = vst [vmem:[#allocation6 + $0x58] sm:$0xff] %v118_v11  ;;  %v119_v12 = vld [vmem:[#allocation2 + $0x60] sm:$0xff]  ;;  %v120_v13 = vld [vmem:[#allocation2 + $0x68] sm:$0xff] }
  0x40   :  { %v121_v14 = vld [vmem:[#allocation2 + $0x70] sm:$0xff]  ;;  %151 = vst [vmem:[#allocation6 + $0x60] sm:$0xff] %v119_v12  ;;  %152 = vst [vmem:[#allocation6 + $0x68] sm:$0xff] %v120_v13  ;;  %v122_v15 = vld [vmem:[#allocation2 + $0x78] sm:$0xff]  ;;  %p299_p6 = pnand %p298_p5, %p292_p2 }
  0x41   :  { %153 = vst [vmem:[#allocation6 + $0x70] sm:$0xff] %v121_v14  ;;  %v123_v16 = vld [vmem:[#allocation2 + $0x80] sm:$0xff]  ;;  %v124_v17 = vld [vmem:[#allocation2 + $0x88] sm:$0xff]  ;;  %154 = vst [vmem:[#allocation6 + $0x78] sm:$0xff] %v122_v15 }
  0x42   :  { %155 = vst [vmem:[#allocation6 + $0x80] sm:$0xff] %v123_v16  ;;  %156 = vst [vmem:[#allocation6 + $0x88] sm:$0xff] %v124_v17  ;;  %v125_v18 = vld [vmem:[#allocation2 + $0x90] sm:$0xff]  ;;  %v126_v19 = vld [vmem:[#allocation2 + $0x98] sm:$0xff] }
  0x43   :  { %v127_v20 = vld [vmem:[#allocation2 + $0xa0] sm:$0xff]  ;;  %157 = vst [vmem:[#allocation6 + $0x90] sm:$0xff] %v125_v18  ;;  %158 = vst [vmem:[#allocation6 + $0x98] sm:$0xff] %v126_v19  ;;  %v128_v21 = vld [vmem:[#allocation2 + $0xa8] sm:$0xff] }
  0x44   :  { %159 = vst [vmem:[#allocation6 + $0xa0] sm:$0xff] %v127_v20  ;;  %v129_v22 = vld [vmem:[#allocation2 + $0xb0] sm:$0xff]  ;;  %v130_v23 = vld [vmem:[#allocation2 + $0xb8] sm:$0xff]  ;;  %160 = vst [vmem:[#allocation6 + $0xa8] sm:$0xff] %v128_v21 }
  0x45   :  { %161 = vst [vmem:[#allocation6 + $0xb0] sm:$0xff] %v129_v22  ;;  %162 = vst [vmem:[#allocation6 + $0xb8] sm:$0xff] %v130_v23  ;;  %v131_v24 = vld [vmem:[#allocation2 + $0xc0] sm:$0xff]  ;;  %v132_v25 = vld [vmem:[#allocation2 + $0xc8] sm:$0xff] }
  0x46   :  { %v133_v26 = vld [vmem:[#allocation2 + $0xd0] sm:$0xff]  ;;  %163 = vst [vmem:[#allocation6 + $0xc0] sm:$0xff] %v131_v24  ;;  %164 = vst [vmem:[#allocation6 + $0xc8] sm:$0xff] %v132_v25  ;;  %v134_v27 = vld [vmem:[#allocation2 + $0xd8] sm:$0xff] }
  0x47   :  { %165 = vst [vmem:[#allocation6 + $0xd0] sm:$0xff] %v133_v26  ;;  %v135_v28 = vld [vmem:[#allocation2 + $0xe0] sm:$0xff]  ;;  %v136_v29 = vld [vmem:[#allocation2 + $0xe8] sm:$0xff]  ;;  %166 = vst [vmem:[#allocation6 + $0xd8] sm:$0xff] %v134_v27 }
  0x48   :  { %167 = vst [vmem:[#allocation6 + $0xe0] sm:$0xff] %v135_v28  ;;  %168 = vst [vmem:[#allocation6 + $0xe8] sm:$0xff] %v136_v29  ;;  %v137_v30 = vld [vmem:[#allocation2 + $0xf0] sm:$0xff]  ;;  %v138_v31 = vld [vmem:[#allocation2 + $0xf8] sm:$0xff] }
  0x49   :  { %169 = vst [vmem:[#allocation6 + $0xf0] sm:$0xff] %v137_v30  ;;  %170 = vst [vmem:[#allocation6 + $0xf8] sm:$0xff] %v138_v31 }
  0x4a   :  { %302 = shalt.err (!%p299_p6)
}
  0x4b   :  { %s303_s22 = scalar_lea.hbm %s401_s2, 4096 }
  0x4c   :  { %p304_p7 = scmp.ne.s32.totalorder %s401_s2, %s303_s22  ;;  %p307_p8 = scmp.lt.u32.totalorder %s303_s22, %s401_s2 }
  0x4e   :  { %p309_p9 = pnand %p307_p8, %p304_p7 }
  0x50   :  { %312 = shalt.err (!%p309_p9)
}
  0x51   :  { %s332_s26 = smov 256   ;;  %s333_s27 = smov 16  }
  0x52   :  { %187 = dma.vmem_to_hbm [thread:$0]  %s182_s18, 4096, %s401_s2, [#allocation7], %s332_s26, %s332_s26, %s333_s27  }
  0x53   :  { %321 = dma.done.wait [#allocation7], 4096  }
  0x54   :  { %322 = vsyncadd [#allocation7], 4294963200 }
  0x55   :  { %191 = vsyncpa [#allocation7], 1 }
  0x56   :  { %192 = vsyncmov [#allocation3] }
  0x59   :  { %s193_s30 = vpop.sfrf %192 }
  0x5a   :  { %p241_p10 = scmp.ne.s32.totalorder %s193_s30, 0 }
  0x5c   :  { %197 = shalt.err (%p241_p10)  }
  0x5d   :  { %199 = vsyncmov [#allocation3 + $0x1] }
  0x60   :  { %s200_s3 = vpop.sfrf %199 }
  0x61   :  { %p242_p11 = scmp.ne.s32.totalorder %s200_s3, 0 }
  0x63   :  { %204 = shalt.err (%p242_p11)  }

</bundles_post_ra>
